<compile_context>
chip_gen: v7x
topology: tpu7x:2x2x1
jax: 0.10.0
libtpu: 0.0.40
codegen_flags: <defaults>
</compile_context>

<pallas_src>
import math

import jax
import jax.numpy as jnp
from jax.experimental import pallas as pl
from jax.experimental.pallas import tpu as pltpu

LANE = 128           # TPU lane width
OUT_PAD = 128        # lane width of the padded final (1-wide) layer fed to the MXU
MAX_TILE_M = 512     # row tile; ~85% of HBM roofline per measured tile sweeps


def _round_up(v, m):
    return ((v + m - 1) // m) * m


def _leaky_relu(x, slope=0.2):
    return jnp.where(x > 0, x, slope * x)


def _choose_tile_m(bp):
    """Row-tile size.

    * bp <= 128: one block spanning the whole packed batch (block dim == array
      dim is always layout-legal, even when unaligned).
    * bp  > 128: 128-aligned tiles (v5e 128x128 MXU / lane alignment), at
      least two grid steps so both of v7x's TensorCores get work, capped at
      MAX_TILE_M.
    """
    if bp <= LANE:
        return bp
    half = _round_up(pl.cdiv(bp, 2), LANE)
    return min(MAX_TILE_M, half)


def discriminator_kernel(x_ref, w1_ref, b1_ref, w2_ref, b2_ref, w3_ref, b3_ref,
                         o_ref):
    """Fused 3-layer MLP tile: (Linear+LeakyReLU) x2 -> Linear -> 1 column.

    Matmul operands are bf16, accumulation is f32 on the MXU; bias add and
    LeakyReLU run in f32 on the VPU.  Dropout(0.5) is identity (eval mode).
    x arrives as f32 and is cast to bf16 here (VPU work hidden under the MXU),
    which avoids an extra wrapper-side HBM pass over x.
    # TODO(synk): training-mode dropout would need pltpu.prng_seed +
    # pltpu.prng_random_bits masking per grid step; omitted to match .eval().
    """
    x = x_ref[...].astype(jnp.bfloat16)

    h1 = jnp.dot(x, w1_ref[...], preferred_element_type=jnp.float32) + b1_ref[...]
    h1 = _leaky_relu(h1).astype(jnp.bfloat16)

    h2 = jnp.dot(h1, w2_ref[...], preferred_element_type=jnp.float32) + b2_ref[...]
    h2 = _leaky_relu(h2).astype(jnp.bfloat16)

    # 128-lane padded final weight keeps the MXU lane-dense; only column 0 is
    # real.  Transpose (tile_m, 128) -> (128, tile_m) on the XLU and store the
    # single real row lane-dense (128x less output HBM traffic than storing
    # the padded slab).
    out = jnp.dot(h2, w3_ref[...], preferred_element_type=jnp.float32) + b3_ref[...]
    o_ref[...] = out.T[0:1, :]


def discriminator_forward(x, params, pac):
    """PyTorch-equivalent forward.  x: (N, input_dim) -> (N // pac, 1)."""
    n, input_dim = x.shape
    assert n % pac == 0, "batch must be divisible by pac"
    pacdim = input_dim * pac
    xp = x.reshape(-1, pacdim)          # == torch .view(-1, pacdim); metadata only
    bp = xp.shape[0]

    w1, b1, w2, b2, w3, b3 = params
    h1_dim, h2_dim = w1.shape[1], w2.shape[1]
    h1p, h2p = _round_up(h1_dim, LANE), _round_up(h2_dim, LANE)

    # Pad hidden/output dims to 128 lanes once (weights are small; zero
    # rows/cols are numerically inert through Linear + LeakyReLU).  The
    # contraction dim (pacdim) is left unpadded so the kernel is the only HBM
    # pass over x.
    w1p = jnp.zeros((pacdim, h1p), jnp.bfloat16).at[:, :h1_dim].set(
        w1.astype(jnp.bfloat16))
    b1p = jnp.zeros((1, h1p), jnp.float32).at[:, :h1_dim].set(b1)
    w2p = jnp.zeros((h1p, h2p), jnp.bfloat16).at[:h1_dim, :h2_dim].set(
        w2.astype(jnp.bfloat16))
    b2p = jnp.zeros((1, h2p), jnp.float32).at[:, :h2_dim].set(b2)
    w3p = jnp.zeros((h2p, OUT_PAD), jnp.bfloat16).at[:h2_dim, :1].set(
        w3.astype(jnp.bfloat16))
    b3p = jnp.zeros((1, OUT_PAD), jnp.float32).at[:, :1].set(b3)

    tile_m = _choose_tile_m(bp)
    num_tiles = pl.cdiv(bp, tile_m)     # ragged last tile handled by Pallas
    grid = (num_tiles,)

    flops = 2 * num_tiles * tile_m * (pacdim * h1p + h1p * h2p + h2p * OUT_PAD)
    bytes_accessed = (xp.size * 4
                      + (w1p.size + w2p.size + w3p.size) * 2
                      + (b1p.size + b2p.size + b3p.size) * 4
                      + num_tiles * tile_m * 4)

    out_row = pl.pallas_call(
        discriminator_kernel,
        out_shape=jax.ShapeDtypeStruct((1, num_tiles * tile_m), jnp.float32),
        grid=grid,
        in_specs=[
            pl.BlockSpec((tile_m, pacdim), lambda i: (i, 0)),   # x tile (f32, streamed)
            pl.BlockSpec((pacdim, h1p), lambda i: (0, 0)),      # W1 (VMEM resident)
            pl.BlockSpec((1, h1p), lambda i: (0, 0)),           # b1
            pl.BlockSpec((h1p, h2p), lambda i: (0, 0)),         # W2
            pl.BlockSpec((1, h2p), lambda i: (0, 0)),           # b2
            pl.BlockSpec((h2p, OUT_PAD), lambda i: (0, 0)),     # W3 (lane padded)
            pl.BlockSpec((1, OUT_PAD), lambda i: (0, 0)),       # b3 (lane padded)
        ],
        out_specs=pl.BlockSpec((1, tile_m), lambda i: (0, i)),  # lane-dense row
        compiler_params=pltpu.CompilerParams(
            dimension_semantics=("parallel",),      # shards row tiles on v7x 2 TCs
            vmem_limit_bytes=48 * 1024 * 1024,      # safe on v5e/v6e/v7x, >> need
        ),
        cost_estimate=pl.CostEstimate(
            flops=flops, transcendentals=0, bytes_accessed=bytes_accessed),
    )(xp, w1p, b1p, w2p, b2p, w3p, b3p)

    return out_row[0, :bp].reshape(bp, 1)


def init_params(key, input_dim, discriminator_dim, pac):
    """Deterministic init mimicking nn.Linear default (U[-1/sqrt(fan_in), +])."""
    dims = [input_dim * pac] + list(discriminator_dim) + [1]
    params = []
    for i in range(len(dims) - 1):
        fan_in, fan_out = dims[i], dims[i + 1]
        key, kw, kb = jax.random.split(key, 3)
        bound = 1.0 / math.sqrt(fan_in)
        w = jax.random.uniform(kw, (fan_in, fan_out), jnp.float32, -bound, bound)
        b = jax.random.uniform(kb, (1, fan_out), jnp.float32, -bound, bound)
        params += [w, b]
    return tuple(params)


def reference_forward(x, params, pac):
    """Plain-JAX reference with the same precision policy (bf16 matmul, f32 acc)."""
    n, input_dim = x.shape
    xp = x.reshape(-1, input_dim * pac)
    w1, b1, w2, b2, w3, b3 = params
    h = _leaky_relu(jnp.dot(xp.astype(jnp.bfloat16), w1.astype(jnp.bfloat16),
                            preferred_element_type=jnp.float32) + b1)
    h = _leaky_relu(jnp.dot(h.astype(jnp.bfloat16), w2.astype(jnp.bfloat16),
                            preferred_element_type=jnp.float32) + b2)
    return jnp.dot(h.astype(jnp.bfloat16), w3.astype(jnp.bfloat16),
                   preferred_element_type=jnp.float32) + b3


if __name__ == "__main__":
    # Shapes consistent with the module: input_dim=16, pac=2, hidden (32, 32).
    input_dim = 16
    pac = 2
    discriminator_dim = (32, 32)

    key = jax.random.PRNGKey(0)
    key, kx1, kx2 = jax.random.split(key, 3)
    params = init_params(key, input_dim, discriminator_dim, pac)

    # Case 1: batch=8 -> packed batch 4, single tile.
    x1 = jax.random.normal(kx1, (8, input_dim), jnp.float32)
    out1 = jax.block_until_ready(discriminator_forward(x1, params, pac))
    ref1 = reference_forward(x1, params, pac)
    assert out1.shape == (8 // pac, 1)
    assert jnp.allclose(out1, ref1, atol=1e-3, rtol=1e-3), "mismatch (small case)"

    # Case 2: batch=600 -> packed batch 300: multi-step grid + ragged last tile.
    x2 = jax.random.normal(kx2, (600, input_dim), jnp.float32)
    out2 = jax.block_until_ready(discriminator_forward(x2, params, pac))
    ref2 = reference_forward(x2, params, pac)
    assert out2.shape == (600 // pac, 1)
    assert jnp.allclose(out2, ref2, atol=1e-3, rtol=1e-3), "mismatch (large case)"

    print("KERNEL_OK")
</pallas_src>

<mosaic_0001>
module attributes {stable_mosaic.version = 11 : i64} {
  func.func @discriminator_kernel(%arg0: i32, %arg1: memref<4x32xf32, #tpu.memory_space<vmem>>, %arg2: memref<32x128xbf16, #tpu.memory_space<vmem>>, %arg3: memref<1x128xf32, #tpu.memory_space<vmem>>, %arg4: memref<128x128xbf16, #tpu.memory_space<vmem>>, %arg5: memref<1x128xf32, #tpu.memory_space<vmem>>, %arg6: memref<128x128xbf16, #tpu.memory_space<vmem>>, %arg7: memref<1x128xf32, #tpu.memory_space<vmem>>, %arg8: memref<1x4xf32, #tpu.memory_space<vmem>>) attributes {dimension_semantics = [#tpu.dimension_semantics<parallel>], iteration_bounds = array<i64: 1>, scalar_prefetch = 0 : i64, scratch_operands = 0 : i64, tpu.core_type = #tpu.core_type<tc>, window_params = [{transform_indices = @transform_0, window_bounds = array<i64: 4, 32>}, {pipeline_mode = #tpu.pipeline_mode<synchronous>, transform_indices = @transform_1, window_bounds = array<i64: 32, 128>}, {pipeline_mode = #tpu.pipeline_mode<synchronous>, transform_indices = @transform_2, window_bounds = array<i64: 1, 128>}, {pipeline_mode = #tpu.pipeline_mode<synchronous>, transform_indices = @transform_3, window_bounds = array<i64: 128, 128>}, {pipeline_mode = #tpu.pipeline_mode<synchronous>, transform_indices = @transform_4, window_bounds = array<i64: 1, 128>}, {pipeline_mode = #tpu.pipeline_mode<synchronous>, transform_indices = @transform_5, window_bounds = array<i64: 128, 128>}, {pipeline_mode = #tpu.pipeline_mode<synchronous>, transform_indices = @transform_6, window_bounds = array<i64: 1, 128>}, {transform_indices = @transform_7, window_bounds = array<i64: 1, 4>}]} {
    %c0 = arith.constant 0 : index
    %c0_0 = arith.constant 0 : index
    %0 = vector.load %arg1[%c0, %c0_0] : memref<4x32xf32, #tpu.memory_space<vmem>>, vector<4x32xf32>
    %1 = arith.truncf %0 : vector<4x32xf32> to vector<4x32xbf16>
    %c0_1 = arith.constant 0 : index
    %c0_2 = arith.constant 0 : index
    %2 = vector.load %arg2[%c0_1, %c0_2] : memref<32x128xbf16, #tpu.memory_space<vmem>>, vector<32x128xbf16>
    %cst = arith.constant dense<0.000000e+00> : vector<4x128xf32>
    %3 = tpu.matmul %1, %2, %cst {dimension_numbers = #tpu.dot_dimension_numbers<[1], [0], [0], [1], [0, 0, 1, 1], [], []>} : vector<4x32xbf16>, vector<32x128xbf16>, vector<4x128xf32> -> vector<4x128xf32>
    %c0_3 = arith.constant 0 : index
    %c0_4 = arith.constant 0 : index
    %4 = vector.load %arg3[%c0_3, %c0_4] : memref<1x128xf32, #tpu.memory_space<vmem>>, vector<1x128xf32>
    %5 = vector.broadcast %4 : vector<1x128xf32> to vector<4x128xf32>
    %6 = arith.addf %3, %5 : vector<4x128xf32>
    %cst_5 = arith.constant 0.000000e+00 : f32
    %7 = vector.broadcast %cst_5 : f32 to vector<4x128xf32>
    %8 = arith.cmpf ogt, %6, %7 : vector<4x128xf32>
    %cst_6 = arith.constant 2.000000e-01 : f32
    %9 = vector.broadcast %cst_6 : f32 to vector<4x128xf32>
    %10 = arith.mulf %9, %6 : vector<4x128xf32>
    %11 = arith.select %8, %6, %10 : vector<4x128xi1>, vector<4x128xf32>
    %12 = arith.truncf %11 : vector<4x128xf32> to vector<4x128xbf16>
    %c0_7 = arith.constant 0 : index
    %c0_8 = arith.constant 0 : index
    %13 = vector.load %arg4[%c0_7, %c0_8] : memref<128x128xbf16, #tpu.memory_space<vmem>>, vector<128x128xbf16>
    %cst_9 = arith.constant dense<0.000000e+00> : vector<4x128xf32>
    %14 = tpu.matmul %12, %13, %cst_9 {dimension_numbers = #tpu.dot_dimension_numbers<[1], [0], [0], [1], [0, 0, 1, 1], [], []>} : vector<4x128xbf16>, vector<128x128xbf16>, vector<4x128xf32> -> vector<4x128xf32>
    %c0_10 = arith.constant 0 : index
    %c0_11 = arith.constant 0 : index
    %15 = vector.load %arg5[%c0_10, %c0_11] : memref<1x128xf32, #tpu.memory_space<vmem>>, vector<1x128xf32>
    %16 = vector.broadcast %15 : vector<1x128xf32> to vector<4x128xf32>
    %17 = arith.addf %14, %16 : vector<4x128xf32>
    %cst_12 = arith.constant 0.000000e+00 : f32
    %18 = vector.broadcast %cst_12 : f32 to vector<4x128xf32>
    %19 = arith.cmpf ogt, %17, %18 : vector<4x128xf32>
    %cst_13 = arith.constant 2.000000e-01 : f32
    %20 = vector.broadcast %cst_13 : f32 to vector<4x128xf32>
    %21 = arith.mulf %20, %17 : vector<4x128xf32>
    %22 = arith.select %19, %17, %21 : vector<4x128xi1>, vector<4x128xf32>
    %23 = arith.truncf %22 : vector<4x128xf32> to vector<4x128xbf16>
    %c0_14 = arith.constant 0 : index
    %c0_15 = arith.constant 0 : index
    %24 = vector.load %arg6[%c0_14, %c0_15] : memref<128x128xbf16, #tpu.memory_space<vmem>>, vector<128x128xbf16>
    %cst_16 = arith.constant dense<0.000000e+00> : vector<4x128xf32>
    %25 = tpu.matmul %23, %24, %cst_16 {dimension_numbers = #tpu.dot_dimension_numbers<[1], [0], [0], [1], [0, 0, 1, 1], [], []>} : vector<4x128xbf16>, vector<128x128xbf16>, vector<4x128xf32> -> vector<4x128xf32>
    %c0_17 = arith.constant 0 : index
    %c0_18 = arith.constant 0 : index
    %26 = vector.load %arg7[%c0_17, %c0_18] : memref<1x128xf32, #tpu.memory_space<vmem>>, vector<1x128xf32>
    %27 = vector.broadcast %26 : vector<1x128xf32> to vector<4x128xf32>
    %28 = arith.addf %25, %27 : vector<4x128xf32>
    %29 = tpu.transpose %28, [1, 0] : vector<4x128xf32> -> vector<128x4xf32>
    %30 = vector.extract_strided_slice %29 {offsets = [0, 0], sizes = [1, 4], strides = [1, 1]} : vector<128x4xf32> to vector<1x4xf32>
    %c0_19 = arith.constant 0 : index
    %c0_20 = arith.constant 0 : index
    %31 = vector.load %arg8[%c0_19, %c0_20] : memref<1x4xf32, #tpu.memory_space<vmem>>, vector<1x4xf32>
    tpu.vector_store %arg8[%c0_19, %c0_20], %30 {strides = array<i32>} : memref<1x4xf32, #tpu.memory_space<vmem>>, vector<1x4xf32>,
    return
  }
  func.func @transform_0(%arg0: i32) -> (i32, i32) {
    %c0_i32 = arith.constant 0 : i32
    %c0_i32_0 = arith.constant 0 : i32
    return %arg0, %c0_i32 : i32, i32
  }
  func.func @transform_1(%arg0: i32) -> (i32, i32) {
    %c0_i32 = arith.constant 0 : i32
    %c0_i32_0 = arith.constant 0 : i32
    %c0_i32_1 = arith.constant 0 : i32
    return %c0_i32, %c0_i32_0 : i32, i32
  }
  func.func @transform_2(%arg0: i32) -> (i32, i32) {
    %c0_i32 = arith.constant 0 : i32
    %c0_i32_0 = arith.constant 0 : i32
    %c0_i32_1 = arith.constant 0 : i32
    return %c0_i32, %c0_i32_0 : i32, i32
  }
  func.func @transform_3(%arg0: i32) -> (i32, i32) {
    %c0_i32 = arith.constant 0 : i32
    %c0_i32_0 = arith.constant 0 : i32
    %c0_i32_1 = arith.constant 0 : i32
    return %c0_i32, %c0_i32_0 : i32, i32
  }
  func.func @transform_4(%arg0: i32) -> (i32, i32) {
    %c0_i32 = arith.constant 0 : i32
    %c0_i32_0 = arith.constant 0 : i32
    %c0_i32_1 = arith.constant 0 : i32
    return %c0_i32, %c0_i32_0 : i32, i32
  }
  func.func @transform_5(%arg0: i32) -> (i32, i32) {
    %c0_i32 = arith.constant 0 : i32
    %c0_i32_0 = arith.constant 0 : i32
    %c0_i32_1 = arith.constant 0 : i32
    return %c0_i32, %c0_i32_0 : i32, i32
  }
  func.func @transform_6(%arg0: i32) -> (i32, i32) {
    %c0_i32 = arith.constant 0 : i32
    %c0_i32_0 = arith.constant 0 : i32
    %c0_i32_1 = arith.constant 0 : i32
    return %c0_i32, %c0_i32_0 : i32, i32
  }
  func.func @transform_7(%arg0: i32) -> (i32, i32) {
    %c0_i32 = arith.constant 0 : i32
    %c0_i32_0 = arith.constant 0 : i32
    return %c0_i32, %arg0 : i32, i32
  }
}

</mosaic_0001>

<bundles_post_ra>
// kernel: tpu_custom_call.1
= control target key start
LH: loop header
LB: loop body
LE: loop exit
PB: predicated region body
PF: predicated region fallthrough
CT: control target
= control target key end

     0   :  { %12 = vsyncpa [#allocation3], 0  ;;  %s818_s0 = inlined_call_operand.hbm [shape: f32[4,32], index: 0, kind: input, shape index: {}]   ;;  %s819_s1 = inlined_call_operand.hbm [shape: bf16[32,128], index: 1, kind: input, shape index: {}]   ;;  %s820_s2 = inlined_call_operand.vmem [shape: f32[1,128], index: 2, kind: input, shape index: {}]   ;;  %s821_s3 = inlined_call_operand.hbm [shape: bf16[128,128], index: 3, kind: input, shape index: {}]   ;;  %s822_s4 = inlined_call_operand.vmem [shape: f32[1,128], index: 4, kind: input, shape index: {}]   ;;  %s823_s5 = inlined_call_operand.hbm [shape: bf16[128,128], index: 5, kind: input, shape index: {}]   ;;  %s824_s6 = inlined_call_operand.vmem [shape: f32[1,128], index: 6, kind: input, shape index: {}]   ;;  %s825_s7 = inlined_call_operand.hbm [shape: f32[1,4], index: 7, kind: output, shape index: {}]  }
   0x1   :  { %13 = vsyncpa [#allocation6], 0 }
   0x2   :  { %14 = vsyncpa [#allocation9], 0 }
   0x3   :  { %15 = vsyncpa [#allocation4], 0  ;;  %s667_s24 = smov [#allocation5]   ;;  %s549_s28 = scalar_lea.hbm %s819_s1, 256 }
   0x4   :  { %s31_s25 = sshll.u32 %s667_s24, 4  ;;  %p550_p0 = scmp.ne.s32.totalorder %s819_s1, %s549_s28  ;;  %s32_s25 = int_to_ptr.vmem [resolvable:$true] %s31_s25 }
   0x5   :  { %p553_p1 = scmp.lt.u32.totalorder %s549_s28, %s819_s1 }
   0x7   :  { %p555_p2 = pnand %p553_p1, %p550_p0 }
   0x9   :  { %558 = shalt.err (!%p555_p2)
}
   0xa   :  { %s559_s10 = scalar_lea.vmem %s32_s25, 256  ;;  %p564_p4 = scmp.lt.s32.totalorder %s32_s25, %s32_s25 }
   0xb   :  { %p560_p3 = scmp.ne.s32.totalorder %s32_s25, %s559_s10  ;;  %p565_p5 = scmp.lt.s32.totalorder %s559_s10, %s559_s10 }
   0xd   :  { %p566_p6 = por %p565_p5, %p564_p4 }
   0xf   :  { %p567_p7 = pnand %p566_p6, %p560_p3 }
  0x11   :  { %570 = shalt.err (!%p567_p7)
}
  0x12   :  { %s668_s11 = smov 64   ;;  %s669_s12 = smov 4  }
  0x13   :  { %37 = dma.hbm_to_vmem [thread:$0]  %s819_s1, 256, %s32_s25, [#allocation6], %s668_s11, %s668_s11, %s669_s12  }
  0x14   :  { %s670_s15 = smov [#allocation2]   ;;  %s671_s17 = smov [#allocation7]  }
  0x15   :  { %s22_s16 = sshll.u32 %s670_s15, 4  ;;  %s45_s18 = sshll.u32 %s671_s17, 4  ;;  %s23_s16 = int_to_ptr.vmem [resolvable:$true] %s22_s16  ;;  %s46_s18 = int_to_ptr.vmem [resolvable:$true] %s45_s18 }
  0x16   :  { %s571_s21 = scalar_lea.hbm %s818_s0, 64 }
  0x17   :  { %p572_p8 = scmp.ne.s32.totalorder %s818_s0, %s571_s21  ;;  %p575_p9 = scmp.lt.u32.totalorder %s571_s21, %s818_s0 }
  0x19   :  { %p577_p10 = pnand %p575_p9, %p572_p8 }
  0x1b   :  { %580 = shalt.err (!%p577_p10)
}
  0x1c   :  { %s581_s1 = scalar_lea.vmem %s23_s16, 64  ;;  %p586_p12 = scmp.lt.s32.totalorder %s23_s16, %s23_s16 }
  0x1d   :  { %p582_p11 = scmp.ne.s32.totalorder %s23_s16, %s581_s1  ;;  %p587_p13 = scmp.lt.s32.totalorder %s581_s1, %s581_s1 }
  0x1f   :  { %p588_p0 = por %p587_p13, %p586_p12 }
  0x21   :  { %p589_p1 = pnand %p588_p0, %p582_p11 }
  0x23   :  { %592 = shalt.err (!%p589_p1)
}
  0x24   :  { %25 = dma.hbm_to_vmem [thread:$0]  %s818_s0, 64, %s23_s16, [#allocation3]  }
  0x25   :  { %s593_s30 = scalar_lea.hbm %s821_s3, 1024 }
  0x26   :  { %p594_p2 = scmp.ne.s32.totalorder %s821_s3, %s593_s30  ;;  %p597_p3 = scmp.lt.u32.totalorder %s593_s30, %s821_s3 }
  0x28   :  { %p599_p4 = pnand %p597_p3, %p594_p2 }
  0x2a   :  { %602 = shalt.err (!%p599_p4)
}
  0x2b   :  { %s603_s14 = scalar_lea.vmem %s46_s18, 1024  ;;  %p608_p6 = scmp.lt.s32.totalorder %s46_s18, %s46_s18 }
  0x2c   :  { %p604_p5 = scmp.ne.s32.totalorder %s46_s18, %s603_s14  ;;  %p609_p7 = scmp.lt.s32.totalorder %s603_s14, %s603_s14 }
  0x2e   :  { %p610_p8 = por %p609_p7, %p608_p6 }
  0x30   :  { %p611_p9 = pnand %p610_p8, %p604_p5 }
  0x32   :  { %614 = shalt.err (!%p611_p9)
}
  0x33   :  { %51 = dma.hbm_to_vmem [thread:$0]  %s821_s3, 1024, %s46_s18, [#allocation6], %s668_s11, %s668_s11, %s669_s12  }
  0x34   :  { %s672_s16 = smov [#allocation8]   ;;  %s615_s21 = scalar_lea.hbm %s823_s5, 1024 }
  0x35   :  { %s59_s17 = sshll.u32 %s672_s16, 4  ;;  %p616_p10 = scmp.ne.s32.totalorder %s823_s5, %s615_s21  ;;  %s60_s17 = int_to_ptr.vmem [resolvable:$true] %s59_s17 }
  0x36   :  { %p619_p11 = scmp.lt.u32.totalorder %s615_s21, %s823_s5 }
  0x38   :  { %p621_p12 = pnand %p619_p11, %p616_p10 }
  0x3a   :  { %624 = shalt.err (!%p621_p12)
}
  0x3b   :  { %s625_s1 = scalar_lea.vmem %s60_s17, 1024  ;;  %p630_p0 = scmp.lt.s32.totalorder %s60_s17, %s60_s17 }
  0x3c   :  { %p626_p13 = scmp.ne.s32.totalorder %s60_s17, %s625_s1  ;;  %p631_p1 = scmp.lt.s32.totalorder %s625_s1, %s625_s1 }
  0x3e   :  { %p632_p2 = por %p631_p1, %p630_p0 }
  0x40   :  { %p633_p3 = pnand %p632_p2, %p626_p13 }
  0x42   :  { %636 = shalt.err (!%p633_p3)
}
  0x43   :  { %65 = dma.hbm_to_vmem [thread:$0]  %s823_s5, 1024, %s60_s17, [#allocation9], %s668_s11, %s668_s11, %s669_s12  }
  0x44   :  { %659 = dma.done.wait [#allocation3], 64  }
  0x45   :  { %660 = vsyncadd [#allocation3], 4294967232 }
  0x46   :  { %661 = dma.done.wait [#allocation6], 1280  }
  0x47   :  { %662 = vsyncadd [#allocation6], 4294966016 }
  0x48   :  { %663 = dma.done.wait [#allocation9], 1024  }
  0x49   :  { %664 = vsyncadd [#allocation9], 4294966272  ;;  %v673_v0 = vmov 0.0   ;;  %vm674_vm0 = vmmov 0   ;;  %v531_v1 = vld [vmem:[#allocation5] sm:$0xff]   ;;  %v532_v2 = vld [vmem:[#allocation5 + $0x8] sm:$0xff]  }
  0x4a   :  { %474 = vmatprep.subr.bf16.mxu0 %v673_v0  ;;  %478 = vmatprep.mubr.msk.bf16.mxu0 %vm674_vm0, %v673_v0  ;;  %v81_v3 = vld [vmem:[#allocation2] sm:$0xf]  ;;  %v533_v4 = vld [vmem:[#allocation7] sm:$0xff]   ;;  %vm106_vm1 = vcmask 261120   ;;  %v535_v7 = vld [vmem:[#allocation7 + $0x10] sm:$0xff]   ;;  %vm412_vm4 = vcmask 24576  }
  0x4b   :  { %482 = vmatprep.subr.bf16.mxu1 %v673_v0  ;;  %498 = vmatprep.mubr.msk.bf16.mxu1 %vm674_vm0, %v673_v0  ;;  %v82_v5 = vpack.c.bf16 %v81_v3, %v81_v3  ;;  %v534_v6 = vld [vmem:[#allocation7 + $0x8] sm:$0xff]   ;;  %v536_v8 = vld [vmem:[#allocation7 + $0x18] sm:$0xff]   ;;  %v537_v9 = vld [vmem:[#allocation7 + $0x20] sm:$0xff]  }
  0x4c   :  { %475 = vmatpush3.bf16.msra.mxu0 %v531_v1  ;;  %483 = vmatpush3.bf16.msra.mxu1 %v533_v4  ;;  %v538_v10 = vld [vmem:[#allocation7 + $0x28] sm:$0xff]   ;;  %v539_v11 = vld [vmem:[#allocation7 + $0x30] sm:$0xff]   ;;  %v540_v12 = vld [vmem:[#allocation7 + $0x38] sm:$0xff]  }
  0x4d   :  { %476 = vmatprep.subr.bf16.mxu0 %v673_v0  ;;  %484 = vmatprep.subr.bf16.mxu1 %v673_v0  ;;  %v541_v13 = vld [vmem:[#allocation8] sm:$0xff]   ;;  %v542_v14 = vld [vmem:[#allocation8 + $0x8] sm:$0xff]   ;;  %v543_v15 = vld [vmem:[#allocation8 + $0x10] sm:$0xff]  }
  0x4e   :  { %v544_v16 = vld [vmem:[#allocation8 + $0x18] sm:$0xff]   ;;  %v545_v17 = vld [vmem:[#allocation8 + $0x20] sm:$0xff]   ;;  %v546_v18 = vld [vmem:[#allocation8 + $0x28] sm:$0xff]  }
  0x4f   :  { %v431_v19 = vld [vmem:[%s820_s2] ss:$0 sm:$0xff]  ;;  %v547_v28 = vld [vmem:[#allocation8 + $0x30] sm:$0xff]   ;;  %v548_v29 = vld [vmem:[#allocation8 + $0x38] sm:$0xff]  }
  0x50   :  { %477 = vmatpush3.bf16.msra.mxu0 %v532_v2  ;;  %485 = vmatpush3.bf16.msra.mxu1 %v534_v6  ;;  %v435_v30 = vld [vmem:[%s822_s4] ss:$0 sm:$0xff]  ;;  %s675_s4 = smov [#allocation10]  }
  0x51   :  { %502 = vmatprep.subr.bf16.mxu0 %v673_v0  ;;  %486 = vmatprep.subr.bf16.mxu1 %v673_v0  ;;  %v444_v39 = vld [vmem:[%s824_s6] ss:$0 sm:$0xff]  ;;  %s420_s28 = sshll.u32 %s675_s4, 4  ;;  %s421_s28 = int_to_ptr.vmem [resolvable:$true] %s420_s28 }
  0x52   :  { %s637_s29 = scalar_lea.vmem %s421_s28, 16  ;;  %s641_s30 = scalar_lea.vmem %s421_s28, 32 }
  0x53   :  { %479 = vmatmul.mubr.msk.bf16.vlgmr.msra.gmra.mrb[0].mxu0 %vm106_vm1, %v82_v5  ;;  %p638_p4 = scmp.ne.s32.totalorder %s421_s28, %s637_s29  ;;  %p642_p5 = scmp.lt.s32.totalorder %s421_s28, %s421_s28 }
  0x54   :  { %518 = vmatprep.mubr.msk.bf16.mxu0 %vm674_vm0, %v673_v0  ;;  %487 = vmatpush3.bf16.msra.mxu1 %v535_v7  ;;  %p643_p6 = scmp.lt.s32.totalorder %s641_s30, %s637_s29 }
  0x55   :  { %488 = vmatprep.subr.bf16.mxu1 %v673_v0  ;;  %503 = vmatpush3.bf16.msra.mxu0 %v541_v13 }
  0x56   :  { %504 = vmatprep.subr.bf16.mxu0 %v673_v0  ;;  %p644_p7 = por %p643_p6, %p642_p5 }
  0x58   :  { %489 = vmatpush3.bf16.msra.mxu1 %v536_v8  ;;  %p645_p8 = pnand %p644_p7, %p638_p4 }
  0x59   :  { %490 = vmatprep.subr.bf16.mxu1 %v673_v0  ;;  %505 = vmatpush3.bf16.msra.mxu0 %v542_v14 }
  0x5a   :  { %506 = vmatprep.subr.bf16.mxu0 %v673_v0 }
  0x5c   :  { %491 = vmatpush3.bf16.msra.mxu1 %v537_v9 }
  0x5d   :  { %492 = vmatprep.subr.bf16.mxu1 %v673_v0  ;;  %507 = vmatpush3.bf16.msra.mxu0 %v543_v15 }
  0x5e   :  { %508 = vmatprep.subr.bf16.mxu0 %v673_v0 }
  0x60   :  { %493 = vmatpush3.bf16.msra.mxu1 %v538_v10 }
  0x61   :  { %494 = vmatprep.subr.bf16.mxu1 %v673_v0  ;;  %509 = vmatpush3.bf16.msra.mxu0 %v544_v16 }
  0x62   :  { %510 = vmatprep.subr.bf16.mxu0 %v673_v0 }
  0x64   :  { %495 = vmatpush3.bf16.msra.mxu1 %v539_v11 }
  0x65   :  { %496 = vmatprep.subr.bf16.mxu1 %v673_v0  ;;  %511 = vmatpush3.bf16.msra.mxu0 %v545_v17 }
  0x66   :  { %512 = vmatprep.subr.bf16.mxu0 %v673_v0 }
  0x68   :  { %497 = vmatpush3.bf16.msra.mxu1 %v540_v12 }
  0x69   :  { %513 = vmatpush3.bf16.msra.mxu0 %v546_v18 }
  0x6a   :  { %514 = vmatprep.subr.bf16.mxu0 %v673_v0 }
  0x6d   :  { %515 = vmatpush3.bf16.msra.mxu0 %v547_v28 }
  0x6e   :  { %516 = vmatprep.subr.bf16.mxu0 %v673_v0 }
  0x71   :  { %517 = vmatpush3.bf16.msra.mxu0 %v548_v29 }
 0x126   :  { %v144_v20 = vpop.f32.mrb[0].mxu0 }
 0x127   :  { %v145_v21 = vadd.f32 %v431_v19, %v144_v20  ;;  %v480_v22 = vpop.f32.mrb[1].mxu0 }
 0x128   :  { %v147_v23 = vpop.f32.mrb[2].mxu0 }
 0x129   :  { %vm150_vm2 = vcmp.gt.f32.partialorder %v145_v21, 0.0  ;;  %v151_v24 = vmul.f32 0.2, %v145_v21  ;;  %v481_v25 = vpop.f32.mrb[3].mxu0 }
 0x12b   :  { %v152_v26 = vsel %vm150_vm2, %v145_v21, %v151_v24 }
 0x12c   :  { %v153_v27 = vpack.c.bf16 %v152_v26, %v152_v26 }
 0x12e   :  { %499 = vmatmul.mubr.bf16.vlgmr.msra.gmra.mrb[0].mxu1 %v153_v27 }
 0x201   :  { %v259_v31 = vpop.f32.mrb[0].mxu1 }
 0x202   :  { %v260_v32 = vadd.f32 %v435_v30, %v259_v31  ;;  %v500_v33 = vpop.f32.mrb[1].mxu1 }
 0x203   :  { %v262_v34 = vpop.f32.mrb[2].mxu1 }
 0x204   :  { %vm265_vm3 = vcmp.gt.f32.partialorder %v260_v32, 0.0  ;;  %v266_v35 = vmul.f32 0.2, %v260_v32  ;;  %v501_v36 = vpop.f32.mrb[3].mxu1 }
 0x206   :  { %v267_v37 = vsel %vm265_vm3, %v260_v32, %v266_v35 }
 0x207   :  { %v268_v38 = vpack.c.bf16 %v267_v37, %v267_v37 }
 0x209   :  { %519 = vmatmul.mubr.bf16.vlgmr.msra.gmra.mrb[4].mxu0 %v268_v38 }
 0x2dc   :  { %v374_v40 = vpop.f32.mrb[4].mxu0 }
 0x2dd   :  { %v520_v41 = vpop.f32.mrb[5].mxu0  ;;  %v375_v42 = vadd.f32 %v444_v39, %v374_v40 }
 0x2de   :  { %v377_v43 = vpop.f32.mrb[6].mxu0 }
 0x2df   :  { %380 = vxpose.xlu0.b32.start.end [1/1] (short) (narrow) %v375_v42, 8  ;;  %v521_v44 = vpop.f32.mrb[7].mxu0 }
 0x35f   :  { %v396_v45 = vpop.trf.xlu0 }
 0x360   :  { %413 = vst.msk [vmem:[#allocation10] sm:$0x1] %vm412_vm4, %v396_v45 }
 0x361   :  { %648 = shalt.err (!%p645_p8)
}
 0x362   :  { %s649_s9 = scalar_lea.hbm %s825_s7, 16 }
 0x363   :  { %p650_p9 = scmp.ne.s32.totalorder %s825_s7, %s649_s9  ;;  %p653_p10 = scmp.lt.u32.totalorder %s649_s9, %s825_s7 }
 0x365   :  { %p655_p11 = pnand %p653_p10, %p650_p9 }
 0x367   :  { %658 = shalt.err (!%p655_p11)
}
 0x368   :  { %423 = dma.vmem_to_hbm [thread:$0]  %s421_s28, 16, %s825_s7, [#allocation4]  }
 0x369   :  { %665 = dma.done.wait [#allocation4], 16  }
 0x36a   :  { %666 = vsyncadd [#allocation4], 4294967280 }
 0x36b   :  { %427 = vsyncpa [#allocation3], 1 }
 0x36c   :  { %428 = vsyncpa [#allocation6], 1 }
 0x36d   :  { %429 = vsyncpa [#allocation9], 1 }
 0x36e   :  { %430 = vsyncpa [#allocation4], 1 }

</bundles_post_ra>
